<compile_context>
chip_gen: v7x
topology: tpu7x:2x2x1
jax: 0.10.0
libtpu: 0.0.40
codegen_flags: <defaults>
</compile_context>

<pallas_src>
import functools

import jax
import jax.numpy as jnp
from jax.experimental import pallas as pl
from jax.experimental.pallas import tpu as pltpu


def _round_up(x, k):
    return ((x + k - 1) // k) * k


def _cdiv(a, b):
    return (a + b - 1) // b


def _choose_pack(m, cap):
    """Largest divisor of m that is <= cap, preferring >= 8 packed rows."""
    divs = [k for k in range(1, min(cap, m) + 1) if m % k == 0]
    good = [k for k in divs if m // k >= 8]
    return max(good) if good else max(divs)


def _gaussian_smearing_kernel(d_ref, s_ref, par_ref, o_ref):
    # d_ref:   (br, k)       f32  -- k packed distances per output row
    # s_ref:   (k, k*N_g)    bf16 -- block-diagonal 0/1 selector (resident)
    # par_ref: (2, k*N_g)    f32  -- row 0: tiled centers, row 1: tiled coeffs
    # o_ref:   (br, k*N_g)   out_dtype
    d = d_ref[...]

    # Exact 3-way bf16 split of the distances.  Each bf16 x {0,1} product is
    # exact and the MXU accumulates in f32, so the lane-broadcast below
    # reproduces the f32 distances to within ~1 ulp while the otherwise-idle
    # MXU does the (br, k) -> (br, k*N_g) replication (no cross-lane
    # shuffles, no iota masks, no XLU reductions).
    hi = d.astype(jnp.bfloat16)
    r1 = d - hi.astype(jnp.float32)
    mid = r1.astype(jnp.bfloat16)
    lo = (r1 - mid.astype(jnp.float32)).astype(jnp.bfloat16)

    s = s_ref[...]
    db = jnp.dot(hi, s, preferred_element_type=jnp.float32)
    db = db + jnp.dot(mid, s, preferred_element_type=jnp.float32)
    db = db + jnp.dot(lo, s, preferred_element_type=jnp.float32)
    # db[r, c*N_g + g] == d[r, c]

    off = par_ref[0:1, :]          # (1, k*N_g)
    coeff = par_ref[1:2, :]        # (1, k*N_g)
    diff = db - off
    expo = coeff * (diff * diff)

    if o_ref.dtype == jnp.bfloat16:
        # bf16 exp doubles EUP throughput on v6e/v7x; precision is ample for
        # a bf16-stored Gaussian basis (on v5e Mosaic extends to f32).
        o_ref[...] = jnp.exp(expo.astype(jnp.bfloat16))
    else:
        o_ref[...] = jnp.exp(expo).astype(o_ref.dtype)


@functools.partial(jax.jit, static_argnames=("centered", "out_dtype"))
def gaussian_smearing_pallas(distances, offset, widths, centered=False,
                             out_dtype=jnp.float32):
    """distances: (N_b, N_at, N_nbh) -> (N_b, N_at, N_nbh, N_g)."""
    nb, nat, nnbh = distances.shape
    n_g = offset.shape[0]
    m = nb * nat * nnbh

    distances = distances.astype(jnp.float32)
    offset = offset.astype(jnp.float32)
    widths = widths.astype(jnp.float32)

    # ---- Gaussian parameters (tiny, plain JAX) -----------------------------
    if centered:
        coeff = -0.5 / (offset * offset)
        off_eff = jnp.zeros_like(offset)   # diff = distance (no center shift)
    else:
        coeff = -0.5 / (widths * widths)
        off_eff = offset

    # ---- packing: k distances per kernel output row ------------------------
    # k | m, so all reshapes are free views and no output padding / slicing is
    # ever needed.  k = 64 whenever possible -> lane width k*N_g = 3200 for
    # N_g = 50 (exactly 25 x 128 lanes: dense, unmasked stores).
    cap = max(1, min(64, (4 * 1024 * 1024) // (32 * n_g)))
    k = _choose_pack(m, cap)
    lane_w = k * n_g
    r_rows = m // k

    d_pack = distances.reshape(r_rows, k)

    # Block-diagonal 0/1 selector: sel[c, c*N_g + g] = 1.
    sel = jnp.kron(jnp.eye(k, dtype=jnp.float32),
                   jnp.ones((1, n_g), jnp.float32)).astype(jnp.bfloat16)
    params = jnp.stack([jnp.tile(off_eff, k), jnp.tile(coeff, k)], axis=0)

    # ---- block-row sizing ---------------------------------------------------
    lane_pad = _round_up(lane_w, 128)
    br = (4 * 1024 * 1024) // (4 * lane_pad)     # ~4 MiB f32 output tile/step
    br = max(8, min(br, 4096) // 8 * 8)
    if r_rows <= 8:
        br = r_rows                              # single full-extent block
    else:
        br = min(br, _round_up(r_rows, 8))
        if br >= r_rows:
            # Guarantee >= 2 grid blocks so the "parallel" axis can shard
            # across v7x's two TensorCores.
            br = max(8, _round_up(_cdiv(r_rows, 2), 8))
    nblk = _cdiv(r_rows, br)

    out_bytes = 2 if out_dtype == jnp.bfloat16 else 4
    cost = pl.CostEstimate(
        flops=6 * k * m * n_g + 4 * m * n_g,
        transcendentals=m * n_g,
        bytes_accessed=4 * m + out_bytes * m * n_g
        + 2 * k * lane_w + 4 * 2 * lane_w,
    )

    out = pl.pallas_call(
        _gaussian_smearing_kernel,
        out_shape=jax.ShapeDtypeStruct((r_rows, lane_w), out_dtype),
        grid_spec=pltpu.PrefetchScalarGridSpec(
            num_scalar_prefetch=0,
            grid=(nblk,),
            in_specs=[
                pl.BlockSpec((br, k), lambda i: (i, 0)),
                pl.BlockSpec((k, lane_w), lambda i: (0, 0)),     # resident
                pl.BlockSpec((2, lane_w), lambda i: (0, 0)),     # resident
            ],
            out_specs=pl.BlockSpec((br, lane_w), lambda i: (i, 0)),
        ),
        compiler_params=pltpu.CompilerParams(
            dimension_semantics=("parallel",),
            vmem_limit_bytes=32 * 1024 * 1024,
        ),
        cost_estimate=cost,
    )(d_pack, sel, params)

    # (r_rows, k*N_g) is exactly the row-major (m, N_g) layout -> free reshape.
    return out.reshape(nb, nat, nnbh, n_g)


def make_gaussian_smearing_params(start=0.0, stop=5.0, n_gaussians=50):
    """Deterministic parameter init matching GaussianSmearing.__init__."""
    offset = jnp.linspace(start, stop, n_gaussians, dtype=jnp.float32)
    widths = (offset[1] - offset[0]) * jnp.ones_like(offset)
    return offset, widths


def _reference(distances, offset, widths, centered=False):
    if not centered:
        coeff = -0.5 / jnp.square(widths)
        diff = distances[..., None] - offset
    else:
        coeff = -0.5 / jnp.square(offset)
        diff = distances[..., None]
    return jnp.exp(coeff * jnp.square(diff))


if __name__ == "__main__":
    key = jax.random.PRNGKey(0)
    offset, widths = make_gaussian_smearing_params(start=0.0, stop=5.0, n_gaussians=50)

    # Small shape consistent with the module: (N_b, N_at, N_nbh) = (2, 4, 8).
    nb, nat, nnbh = 2, 4, 8
    distances = jax.random.uniform(key, (nb, nat, nnbh), dtype=jnp.float32,
                                   minval=0.0, maxval=5.0)

    out = jax.block_until_ready(
        gaussian_smearing_pallas(distances, offset, widths, centered=False))
    ref = _reference(distances, offset, widths, centered=False)
    assert out.shape == (nb, nat, nnbh, 50)
    assert jnp.allclose(out, ref, atol=1e-5, rtol=1e-5)

    # centered=True path (off_eff = 0, coeff = -0.5/offset^2).
    out_c = jax.block_until_ready(
        gaussian_smearing_pallas(distances, offset, widths, centered=True))
    ref_c = _reference(distances, offset, widths, centered=True)
    assert jnp.allclose(out_c, ref_c, atol=1e-5, rtol=1e-5)

    # Optional bf16 output (compute in f32, cast at the store; bf16 exp).
    out_bf16 = jax.block_until_ready(
        gaussian_smearing_pallas(distances, offset, widths,
                                 centered=False, out_dtype=jnp.bfloat16))
    assert jnp.allclose(out_bf16.astype(jnp.float32), ref, atol=3e-2, rtol=3e-2)

    # Larger shape exercising the dense k=64 packing, multiple grid blocks and
    # a ragged (masked) last row block: m = 1152 -> 18 packed rows, 2 blocks.
    nb2, nat2, nnbh2 = 4, 8, 36
    d2 = jax.random.uniform(jax.random.PRNGKey(0), (nb2, nat2, nnbh2),
                            dtype=jnp.float32, minval=0.0, maxval=5.0)
    out2 = jax.block_until_ready(gaussian_smearing_pallas(d2, offset, widths))
    ref2 = _reference(d2, offset, widths, centered=False)
    assert out2.shape == (nb2, nat2, nnbh2, 50)
    assert jnp.allclose(out2, ref2, atol=1e-5, rtol=1e-5)

    # Odd size (m = 30) exercising the small-k fallback path.
    nb3, nat3, nnbh3 = 2, 3, 5
    d3 = jax.random.uniform(jax.random.PRNGKey(0), (nb3, nat3, nnbh3),
                            dtype=jnp.float32, minval=0.0, maxval=5.0)
    out3 = jax.block_until_ready(gaussian_smearing_pallas(d3, offset, widths))
    ref3 = _reference(d3, offset, widths, centered=False)
    assert jnp.allclose(out3, ref3, atol=1e-5, rtol=1e-5)

    print("KERNEL_OK")
</pallas_src>

<mosaic_0001>
module attributes {stable_mosaic.version = 11 : i64} {
  func.func @_gaussian_smearing_kernel(%arg0: i32, %arg1: memref<8x8xf32, #tpu.memory_space<vmem>>, %arg2: memref<8x400xbf16, #tpu.memory_space<vmem>>, %arg3: memref<2x400xf32, #tpu.memory_space<vmem>>, %arg4: memref<8x400xf32, #tpu.memory_space<vmem>>) attributes {dimension_semantics = [#tpu.dimension_semantics<parallel>], iteration_bounds = array<i64: 1>, scalar_prefetch = 0 : i64, scratch_operands = 0 : i64, tpu.core_type = #tpu.core_type<tc>, window_params = [{transform_indices = @transform_0, window_bounds = array<i64: 8, 8>}, {pipeline_mode = #tpu.pipeline_mode<synchronous>, transform_indices = @transform_1, window_bounds = array<i64: 8, 400>}, {pipeline_mode = #tpu.pipeline_mode<synchronous>, transform_indices = @transform_2, window_bounds = array<i64: 2, 400>}, {transform_indices = @transform_3, window_bounds = array<i64: 8, 400>}]} {
    %c0 = arith.constant 0 : index
    %c0_0 = arith.constant 0 : index
    %0 = vector.load %arg1[%c0, %c0_0] : memref<8x8xf32, #tpu.memory_space<vmem>>, vector<8x8xf32>
    %1 = arith.truncf %0 : vector<8x8xf32> to vector<8x8xbf16>
    %2 = arith.extf %1 : vector<8x8xbf16> to vector<8x8xf32>
    %3 = arith.subf %0, %2 : vector<8x8xf32>
    %4 = arith.truncf %3 : vector<8x8xf32> to vector<8x8xbf16>
    %5 = arith.extf %4 : vector<8x8xbf16> to vector<8x8xf32>
    %6 = arith.subf %3, %5 : vector<8x8xf32>
    %7 = arith.truncf %6 : vector<8x8xf32> to vector<8x8xbf16>
    %c0_1 = arith.constant 0 : index
    %c0_2 = arith.constant 0 : index
    %8 = vector.load %arg2[%c0_1, %c0_2] : memref<8x400xbf16, #tpu.memory_space<vmem>>, vector<8x400xbf16>
    %cst = arith.constant dense<0.000000e+00> : vector<8x400xf32>
    %9 = tpu.matmul %1, %8, %cst {dimension_numbers = #tpu.dot_dimension_numbers<[1], [0], [0], [1], [0, 0, 1, 1], [], []>} : vector<8x8xbf16>, vector<8x400xbf16>, vector<8x400xf32> -> vector<8x400xf32>
    %cst_3 = arith.constant dense<0.000000e+00> : vector<8x400xf32>
    %10 = tpu.matmul %4, %8, %cst_3 {dimension_numbers = #tpu.dot_dimension_numbers<[1], [0], [0], [1], [0, 0, 1, 1], [], []>} : vector<8x8xbf16>, vector<8x400xbf16>, vector<8x400xf32> -> vector<8x400xf32>
    %11 = arith.addf %9, %10 : vector<8x400xf32>
    %cst_4 = arith.constant dense<0.000000e+00> : vector<8x400xf32>
    %12 = tpu.matmul %7, %8, %cst_4 {dimension_numbers = #tpu.dot_dimension_numbers<[1], [0], [0], [1], [0, 0, 1, 1], [], []>} : vector<8x8xbf16>, vector<8x400xbf16>, vector<8x400xf32> -> vector<8x400xf32>
    %13 = arith.addf %11, %12 : vector<8x400xf32>
    %c0_5 = arith.constant 0 : index
    %c0_6 = arith.constant 0 : index
    %14 = vector.load %arg3[%c0_5, %c0_6] : memref<2x400xf32, #tpu.memory_space<vmem>>, vector<1x400xf32>
    %c1 = arith.constant 1 : index
    %c0_7 = arith.constant 0 : index
    %15 = vector.load %arg3[%c1, %c0_7] : memref<2x400xf32, #tpu.memory_space<vmem>>, vector<1x400xf32>
    %16 = vector.broadcast %14 : vector<1x400xf32> to vector<8x400xf32>
    %17 = arith.subf %13, %16 : vector<8x400xf32>
    %18 = arith.mulf %17, %17 : vector<8x400xf32>
    %19 = vector.broadcast %15 : vector<1x400xf32> to vector<8x400xf32>
    %20 = arith.mulf %19, %18 : vector<8x400xf32>
    %21 = math.exp %20 : vector<8x400xf32>
    %c0_8 = arith.constant 0 : index
    %c0_9 = arith.constant 0 : index
    %22 = vector.load %arg4[%c0_8, %c0_9] : memref<8x400xf32, #tpu.memory_space<vmem>>, vector<8x400xf32>
    tpu.vector_store %arg4[%c0_8, %c0_9], %21 {strides = array<i32>} : memref<8x400xf32, #tpu.memory_space<vmem>>, vector<8x400xf32>,
    return
  }
  func.func @transform_0(%arg0: i32) -> (i32, i32) {
    %c0_i32 = arith.constant 0 : i32
    %c0_i32_0 = arith.constant 0 : i32
    return %arg0, %c0_i32 : i32, i32
  }
  func.func @transform_1(%arg0: i32) -> (i32, i32) {
    %c0_i32 = arith.constant 0 : i32
    %c0_i32_0 = arith.constant 0 : i32
    %c0_i32_1 = arith.constant 0 : i32
    return %c0_i32, %c0_i32_0 : i32, i32
  }
  func.func @transform_2(%arg0: i32) -> (i32, i32) {
    %c0_i32 = arith.constant 0 : i32
    %c0_i32_0 = arith.constant 0 : i32
    %c0_i32_1 = arith.constant 0 : i32
    return %c0_i32, %c0_i32_0 : i32, i32
  }
  func.func @transform_3(%arg0: i32) -> (i32, i32) {
    %c0_i32 = arith.constant 0 : i32
    %c0_i32_0 = arith.constant 0 : i32
    return %arg0, %c0_i32 : i32, i32
  }
}

</mosaic_0001>

<bundles_post_ra>
// kernel: tile.17
= control target key start
LH: loop header
LB: loop body
LE: loop exit
PB: predicated region body
PF: predicated region fallthrough
CT: control target
= control target key end

     0   :  { %s22_s0 = inlined_call_operand.vmem [shape: f32[50], index: 0, kind: input, shape index: {}]   ;;  %s23_s1 = inlined_call_operand.vmem [shape: f32[8,50], index: 1, kind: output, shape index: {}]  }
   0x1   :  { %v4_v0 = vld [vmem:[%s22_s0] ss:$0 sm:$0xff] }
   0x2   :  { %5 = vst [vmem:[%s23_s1] sm:$0xff] %v4_v0 }

// kernel: tile.19
= control target key start
LH: loop header
LB: loop body
LE: loop exit
PB: predicated region body
PF: predicated region fallthrough
CT: control target
= control target key end

     0   :  { %vm9_vm0 = vcmask 48128   ;;  %vm36_vm1 = vcmask 277504   ;;  %s118_s14 = smov 122   ;;  %vm23_vm2 = vcmask 228352   ;;  %s119_s19 = smov 94   ;;  %vm3_vm3 = vcmask 408576   ;;  %s180_s0 = inlined_call_operand.vmem [shape: f32[8,50], index: 0, kind: input, shape index: {}]   ;;  %s181_s1 = inlined_call_operand.vmem [shape: f32[1,400], index: 1, kind: output, shape index: {}]  }
   0x1   :  { %v98_v0 = vld [vmem:[%s180_s0 + $0x5] sm:$0x1]   ;;  %v102_v3 = vld [vmem:[%s180_s0 + $0x7] sm:$0x1]   ;;  %v100_v6 = vld [vmem:[%s180_s0 + $0x2] sm:$0x1]  }
   0x2   :  { %v99_v1 = vld [vmem:[%s180_s0 + $0x5] sm:$0x1]   ;;  %v103_v4 = vld [vmem:[%s180_s0 + $0x7] sm:$0x1]   ;;  %v101_v7 = vld [vmem:[%s180_s0 + $0x2] sm:$0x1]  }
   0x3   :  { %v10_v2 = vsel %vm9_vm0, %v99_v1, %v98_v0  ;;  %v37_v5 = vsel %vm36_vm1, %v103_v4, %v102_v3  ;;  %v24_v8 = vsel %vm23_vm2, %v101_v7, %v100_v6  ;;  %v104_v9 = vld [vmem:[%s180_s0 + $0x4] sm:$0x1]   ;;  %v2_v10 = vld [vmem:[%s180_s0] sm:$0x1]   ;;  %s120_s24 = smov 100   ;;  %s121_s25 = smov 72  }
   0x4   :  { %11 = vrot.lane.b32.xlu0 %v10_v2, %s118_s14  ;;  %38 = vrot.lane.b32.xlu1 %v37_v5, %s119_s19  ;;  %v105_v11 = vld [vmem:[%s180_s0 + $0x1] sm:$0x1]   ;;  %4 = vst.msk [vmem:[#allocation0] sm:$0x1] %vm3_vm3, %v2_v10   ;;  %v106_v12 = vld [vmem:[%s180_s0 + $0x6] sm:$0x1]  }
   0x5   :  { %s122_s30 = smov 50   ;;  %s123_s2 = smov 44   ;;  %v107_v13 = vld [vmem:[%s180_s0 + $0x3] sm:$0x1]   ;;  %vm13_vm4 = vcmask 359424   ;;  %vm16_vm5 = vcmask 1048528  }
   0x6   :  { %s124_s0 = smov 22   ;;  %vm40_vm6 = vcmask 130048   ;;  %vm43_vm7 = vcmask 1048304   ;;  %vm27_vm8 = vcmask 179200   ;;  %vm30_vm9 = vcmask 1048352  }
   0x7   :  { %vm50_vm10 = vcmask 998976   ;;  %vm57_vm11 = vcmask 818576   ;;  %vm63_vm12 = vcmask 769376   ;;  %vm70_vm13 = vcmask 588976  }
   0x8   :  { %25 = vrot.lane.b32.xlu0 %v24_v8, %s120_s24  ;;  %48 = vrot.lane.b32.xlu1 %v104_v9, %s121_s25 }
   0xc   :  { %55 = vrot.lane.b32.xlu0 %v105_v11, %s122_s30  ;;  %61 = vrot.lane.b32.xlu1 %v106_v12, %s123_s2 }
  0x10   :  { %68 = vrot.lane.b32.xlu0 %v107_v13, %s124_s0 }
  0x76   :  { %v12_v14 = vpop.permute.xlu0 %11   ;;  %v39_v15 = vpop.permute.xlu1 %38  }
  0x77   :  { %15 = vst.msk [vmem:[#allocation0 + $0x10] sm:$0x1] %vm13_vm4, %v12_v14  }
  0x78   :  { %18 = vst.msk [vmem:[#allocation0 + $0x8] sm:$0x1] %vm16_vm5, %v12_v14  }
  0x79   :  { %42 = vst.msk [vmem:[#allocation0 + $0x18] sm:$0x1] %vm40_vm6, %v39_v15  }
  0x7a   :  { %45 = vst.msk [vmem:[#allocation0 + $0x10] sm:$0x1] %vm43_vm7, %v39_v15   ;;  %v26_v16 = vpop.permute.xlu0 %25   ;;  %v49_v17 = vpop.permute.xlu1 %48  }
  0x7b   :  { %29 = vst.msk [vmem:[#allocation0 + $0x8] sm:$0x1] %vm27_vm8, %v26_v16  }
  0x7c   :  { %31 = vst.msk [vmem:[#allocation0] sm:$0x1] %vm30_vm9, %v26_v16  }
  0x7d   :  { %52 = vst.msk [vmem:[#allocation0 + $0x8] sm:$0x1] %vm50_vm10, %v49_v17  }
  0x7e   :  { %v56_v18 = vpop.permute.xlu0 %55   ;;  %v62_v20 = vpop.permute.xlu1 %61  }
  0x7f   :  { %58 = vst.msk [vmem:[#allocation0] sm:$0x1] %vm57_vm11, %v56_v18  }
  0x80   :  { %v91_v19 = vld [vmem:[#allocation0 + $0x18] sm:$0x1]  ;;  %65 = vst.msk [vmem:[#allocation0 + $0x10] sm:$0x1] %vm63_vm12, %v62_v20  }
  0x81   :  { %110 = vst [vmem:[%s181_s1 + $0x3] sm:$0x1] %v91_v19 }
  0x82   :  { %v69_v21 = vpop.permute.xlu0 %68  }
  0x83   :  { %72 = vst.msk [vmem:[#allocation0 + $0x8] sm:$0x1] %vm70_vm13, %v69_v21  }
  0x86   :  { %v76_v22 = vld [vmem:[#allocation0] sm:$0x1] }
  0x87   :  { %78 = vst [vmem:[%s181_s1] sm:$0x1] %v76_v22  ;;  %v85_v23 = vld [vmem:[#allocation0 + $0x10] sm:$0x1] }
  0x88   :  { %109 = vst [vmem:[%s181_s1 + $0x2] sm:$0x1] %v85_v23 }
  0x8a   :  { %v80_v24 = vld [vmem:[#allocation0 + $0x8] sm:$0x1] }
  0x8b   :  { %108 = vst [vmem:[%s181_s1 + $0x1] sm:$0x1] %v80_v24 }

// kernel: gaussian_smearing_pallas.1
= control target key start
LH: loop header
LB: loop body
LE: loop exit
PB: predicated region body
PF: predicated region fallthrough
CT: control target
= control target key end

     0   :  { %vm39_vm0 = vcmask 1043456   ;;  %v428_v2 = vmov 0   ;;  %vm35_vm1 = vcmask 64512   ;;  %v312_v17 = vlaneseq  ;;  %s490_s1 = inlined_call_operand.vmem [shape: bf16[8,400], index: 1, kind: input, shape index: {}]   ;;  %s491_s0 = inlined_call_operand.vmem [shape: f32[8,8], index: 0, kind: input, shape index: {}]   ;;  %s492_s2 = inlined_call_operand.vmem [shape: f32[2,400], index: 2, kind: input, shape index: {}]   ;;  %s493_s3 = inlined_call_operand.vmem [shape: f32[8,400], index: 3, kind: output, shape index: {}]  }
   0x1   :  { %v23_v0 = vld [vmem:[%s490_s1] sm:$0xff]  ;;  %v24_v1 = vld [vmem:[%s490_s1 + $0x8] sm:$0xff]  ;;  %84 = vmatprep.mubr.bf16.mxu0 %v428_v2  ;;  %125 = vmatprep.mubr.bf16.mxu1 %v428_v2  ;;  %vm376_vm2 = vcmask 130048  }
   0x2   :  { %v15_v3 = vld [vmem:[%s491_s0] sm:$0xff]  ;;  %v383_v4 = vcombine.high %v23_v0, %v23_v0  ;;  %v385_v5 = vcombine.high %v24_v1, %v24_v1  ;;  %v382_v6 = vcombine.low %v23_v0, %v23_v0  ;;  %v384_v7 = vcombine.low %v24_v1, %v24_v1 }
   0x3   :  { %v16_v8 = vpack.c.bf16 %v15_v3, %v15_v3  ;;  %v313_v18 = vshrl.u32 %v312_v17, 7  ;;  %v308_v21 = vld [vmem:[%s492_s2] ss:$2 sm:$0xf] }
   0x4   :  { %386 = vmatprep.subr.msk.bf16.mxu0 %vm39_vm0, %v383_v4  ;;  %388 = vmatprep.subr.msk.bf16.mxu1 %vm39_vm0, %v385_v5  ;;  %v41_v9 = vsel %vm39_vm0, %v382_v6, 0  ;;  %v47_v10 = vsel %vm39_vm0, %v384_v7, 0  ;;  %v398_v26 = vld [vmem:[%s492_s2 + $0x1] ss:$2 sm:$0xf] }
   0x5   :  { %53 = vmatpush1.bf16.msra.mxu0 %v41_v9  ;;  %94 = vmatpush1.bf16.msra.mxu1 %v47_v10  ;;  %v17_v11 = vunpack.c.l.bf16 %v16_v8  ;;  %v314_v19 = vsub.s32 0, %v313_v18  ;;  %v322_v20 = vsub.s32 2, %v313_v18  ;;  %v318_v22 = vsub.s32 1, %v313_v18 }
   0x6   :  { %390 = vmatprep.subr.msk.bf16.mxu0 %vm39_vm0, %v383_v4  ;;  %392 = vmatprep.subr.msk.bf16.mxu1 %vm39_vm0, %v385_v5  ;;  %v326_v23 = vsub.s32 3, %v313_v18 }
   0x7   :  { %v18_v12 = vsub.f32 %v15_v3, %v17_v11  ;;  %v315_v24 = vrot.slane %v308_v21, %v314_v19  ;;  %v323_v25 = vrot.slane %v308_v21, %v322_v20  ;;  %v319_v27 = vrot.slane %v308_v21, %v318_v22 }
   0x8   :  { %v327_v28 = vrot.slane %v308_v21, %v326_v23  ;;  %v344_v32 = vrot.slane %v398_v26, %v314_v19  ;;  %v352_v34 = vrot.slane %v398_v26, %v322_v20  ;;  %v348_v38 = vrot.slane %v398_v26, %v318_v22 }
   0x9   :  { %v19_v13 = vpack.c.bf16 %v18_v12, %v18_v12  ;;  %v356_v40 = vrot.slane %v398_v26, %v326_v23 }
   0xb   :  { %387 = vmatmul.mubr.msk.bf16.vlgmr.msra.gmra.mrb[0].mxu0 %vm35_vm1, %v19_v13  ;;  %389 = vmatmul.mubr.msk.bf16.vlgmr.msra.gmra.mrb[0].mxu1 %vm35_vm1, %v19_v13  ;;  %v20_v14 = vunpack.c.l.bf16 %v19_v13 }
   0xc   :  { %138 = vmatpush1.bf16.msra.mxu0 %v41_v9  ;;  %179 = vmatpush1.bf16.msra.mxu1 %v47_v10 }
   0xd   :  { %169 = vmatprep.mubr.bf16.mxu0 %v428_v2  ;;  %210 = vmatprep.mubr.bf16.mxu1 %v428_v2  ;;  %v21_v15 = vsub.f32 %v18_v12, %v20_v14 }
   0xe   :  { %394 = vmatprep.subr.msk.bf16.mxu0 %vm39_vm0, %v383_v4  ;;  %396 = vmatprep.subr.msk.bf16.mxu1 %vm39_vm0, %v385_v5 }
   0xf   :  { %v22_v16 = vpack.c.bf16 %v21_v15, %v21_v15 }
  0x17   :  { %391 = vmatmul.mubr.msk.bf16.vlgmr.msra.gmra.mrb[0].mxu0 %vm35_vm1, %v16_v8  ;;  %393 = vmatmul.mubr.msk.bf16.vlgmr.msra.gmra.mrb[0].mxu1 %vm35_vm1, %v16_v8 }
  0x18   :  { %223 = vmatpush1.bf16.msra.mxu0 %v41_v9  ;;  %264 = vmatpush1.bf16.msra.mxu1 %v47_v10 }
  0x19   :  { %254 = vmatprep.mubr.bf16.mxu0 %v428_v2  ;;  %295 = vmatprep.mubr.bf16.mxu1 %v428_v2 }
  0x23   :  { %395 = vmatmul.mubr.msk.bf16.vlgmr.msra.gmra.mrb[0].mxu0 %vm35_vm1, %v22_v16  ;;  %397 = vmatmul.mubr.msk.bf16.vlgmr.msra.gmra.mrb[0].mxu1 %vm35_vm1, %v22_v16 }
  0xf6   :  { %v256_v29 = vpop.f32.mrb[0].mxu0  ;;  %v297_v30 = vpop.f32.mrb[0].mxu1 }
  0xf7   :  { %v332_v31 = vsub.f32 %v256_v29, %v315_v24  ;;  %v334_v33 = vsub.f32 %v297_v30, %v323_v25  ;;  %v258_v35 = vpop.f32.mrb[1].mxu0  ;;  %v299_v36 = vpop.f32.mrb[1].mxu1 }
  0xf8   :  { %v333_v37 = vsub.f32 %v258_v35, %v319_v27  ;;  %v335_v39 = vsub.f32 %v299_v36, %v327_v28  ;;  %v260_v41 = vpop.f32.mrb[2].mxu0  ;;  %v301_v42 = vpop.f32.mrb[2].mxu1 }
  0xf9   :  { %v336_v43 = vmul.f32 %v332_v31, %v332_v31  ;;  %v338_v44 = vmul.f32 %v334_v33, %v334_v33  ;;  %v261_v45 = vpop.f32.mrb[3].mxu0  ;;  %v302_v46 = vpop.f32.mrb[3].mxu1 }
  0xfa   :  { %v337_v47 = vmul.f32 %v333_v37, %v333_v37  ;;  %v339_v48 = vmul.f32 %v335_v39, %v335_v39 }
  0xfb   :  { %v361_v49 = vmul.f32 %v344_v32, %v336_v43  ;;  %v363_v50 = vmul.f32 %v352_v34, %v338_v44 }
  0xfc   :  { %v362_v51 = vmul.f32 %v348_v38, %v337_v47  ;;  %v364_v52 = vmul.f32 %v356_v40, %v339_v48 }
  0xfd   :  { %v365_v53 = vmul.f32 1.442695, %v361_v49  ;;  %v369_v54 = vmul.f32 1.442695, %v363_v50 }
  0xfe   :  { %v367_v55 = vmul.f32 1.442695, %v362_v51  ;;  %v371_v56 = vmul.f32 1.442695, %v364_v52 }
  0xff   :  { %420 = vpow2.f32 %v365_v53 }
 0x100   :  { %422 = vpow2.f32 %v369_v54 }
 0x101   :  { %424 = vpow2.f32 %v367_v55 }
 0x102   :  { %426 = vpow2.f32 %v371_v56 }
 0x109   :  { %v421_v57 = vpop.eup %420 }
 0x10a   :  { %v423_v58 = vpop.eup %422  ;;  %373 = vst [vmem:[%s493_s3] sm:$0xff] %v421_v57 }
 0x10b   :  { %v425_v59 = vpop.eup %424  ;;  %375 = vst [vmem:[%s493_s3 + $0x10] sm:$0xff] %v423_v58 }
 0x10c   :  { %v427_v60 = vpop.eup %426  ;;  %374 = vst [vmem:[%s493_s3 + $0x8] sm:$0xff] %v425_v59 }
 0x10d   :  { %377 = vst.msk [vmem:[%s493_s3 + $0x18] sm:$0xff] %vm376_vm2, %v427_v60 }

</bundles_post_ra>
